<compile_context>
chip_gen: v5e
topology: v5e:2x2
jax: 0.10.0
libtpu: 0.0.40
codegen_flags: <defaults>
</compile_context>

<pallas_src>
import functools

import jax
import jax.numpy as jnp
from jax.experimental import pallas as pl
from jax.experimental.pallas import tpu as pltpu

IN_DIM = 10
IN_PAD = 16              # zero-padded contraction dim (exact: pad columns are 0)
H1, H2 = 32, 64
H1_PAD, H2_PAD = 128, 128
OUT = 28 * 28            # 784 — written exactly, no lane padding


def _round_up(x, m):
    return (x + m - 1) // m * m


def decoder_kernel(x_ref, w1_ref, b1_ref, w2_ref, b2_ref, w3_ref, b3_ref, o_ref):
    # Three MXU matmuls (bf16 operands, f32 accumulation) + VPU bias/ReLU + EUP sigmoid.
    x = x_ref[...].astype(w1_ref.dtype)                                 # (TB, 16) bf16
    h1 = jnp.dot(x, w1_ref[...], preferred_element_type=jnp.float32) + b1_ref[...]
    h1 = jnp.maximum(h1, 0.0)                                           # (TB, 128) f32
    h2 = jnp.dot(h1.astype(w2_ref.dtype), w2_ref[...],
                 preferred_element_type=jnp.float32) + b2_ref[...]
    h2 = jnp.maximum(h2, 0.0)                                           # (TB, 128) f32
    logits = jnp.dot(h2.astype(w3_ref.dtype), w3_ref[...],
                     preferred_element_type=jnp.float32) + b3_ref[...]
    o_ref[...] = jax.nn.sigmoid(logits).astype(o_ref.dtype)             # (TB, 784)


@functools.partial(jax.jit, static_argnames=("block_b", "out_dtype"))
def decoder_forward(x, params, block_b=512, out_dtype=jnp.float32):
    """x: (B, 10) f32. params: from pack_params. Returns (B, 784) in out_dtype."""
    w1, b1, w2, b2, w3, b3 = params
    B = x.shape[0]

    # Zero-pad the (tiny) feature dim 10 -> 16; exact, and keeps K sublane-aligned.
    if x.shape[1] != IN_PAD:
        x = jnp.pad(x, ((0, 0), (0, IN_PAD - x.shape[1])))

    # Batch tile: as large as block_b (amortizes per-grid-step overhead),
    # multiple of 8 for the f32 x / out blocks.
    tb = min(block_b, _round_up(B, 8))
    # Ensure big batches span >= 2 grid steps (megacore sharding on v7x).
    if B <= tb and B >= 256:
        tb = _round_up(-(-B // 2), 8)
    grid = (pl.cdiv(B, tb),)     # trailing partial block handled by masked writes

    pinned = lambda shape: pl.BlockSpec(shape, lambda i: (0, 0))  # VMEM-resident

    out_itemsize = jnp.dtype(out_dtype).itemsize
    flops = 2 * B * (IN_PAD * H1_PAD + H1_PAD * H2_PAD + H2_PAD * OUT)
    bytes_accessed = int(
        x.size * x.dtype.itemsize
        + sum(p.size * p.dtype.itemsize for p in params)
        + B * OUT * out_itemsize
    )

    return pl.pallas_call(
        decoder_kernel,
        out_shape=jax.ShapeDtypeStruct((B, OUT), out_dtype),
        grid=grid,
        in_specs=[
            pl.BlockSpec((tb, IN_PAD), lambda i: (i, 0)),   # streamed per batch tile
            pinned(w1.shape), pinned(b1.shape),
            pinned(w2.shape), pinned(b2.shape),
            pinned(w3.shape), pinned(b3.shape),
        ],
        out_specs=pl.BlockSpec((tb, OUT), lambda i: (i, 0)),
        compiler_params=pltpu.CompilerParams(
            dimension_semantics=("parallel",),
        ),
        cost_estimate=pl.CostEstimate(
            flops=flops,
            transcendentals=B * OUT,
            bytes_accessed=bytes_accessed,
        ),
    )(x, w1, b1, w2, b2, w3, b3)


def init_params(key):
    """Logical (unpadded, f32) parameters, matching the nn.Module shapes.
    Stored as (in_features, out_features) so the kernel computes y = x @ W + b."""
    k = jax.random.split(key, 6)
    w1 = jax.random.normal(k[0], (IN_DIM, H1), jnp.float32) * 0.1
    b1 = jax.random.normal(k[1], (H1,), jnp.float32) * 0.1
    w2 = jax.random.normal(k[2], (H1, H2), jnp.float32) * 0.1
    b2 = jax.random.normal(k[3], (H2,), jnp.float32) * 0.1
    w3 = jax.random.normal(k[4], (H2, OUT), jnp.float32) * 0.1
    b3 = jax.random.normal(k[5], (OUT,), jnp.float32) * 0.1
    return (w1, b1, w2, b2, w3, b3)


def pack_params(params, weight_dtype=jnp.bfloat16):
    """Zero-pad hidden widths to 128 and the contraction dim 10->16, cast the
    matmul weights to bf16.  Zero padding is exact: padded rows/cols contribute
    nothing and ReLU(0)=0.  The output width stays exactly 784."""
    w1, b1, w2, b2, w3, b3 = params

    def pad_to(a, shape):
        out = jnp.zeros(shape, a.dtype)
        return out.at[tuple(slice(0, s) for s in a.shape)].set(a)

    w1p = pad_to(w1, (IN_PAD, H1_PAD)).astype(weight_dtype)
    b1p = pad_to(b1.reshape(1, -1), (1, H1_PAD))            # biases stay f32
    w2p = pad_to(w2, (H1_PAD, H2_PAD)).astype(weight_dtype)
    b2p = pad_to(b2.reshape(1, -1), (1, H2_PAD))
    w3p = pad_to(w3, (H2_PAD, OUT)).astype(weight_dtype)    # exact 784-wide output
    b3p = b3.reshape(1, -1)                                 # (1, 784) f32
    return (w1p, b1p, w2p, b2p, w3p, b3p)


def reference_forward(x, params):
    """Pure-JAX f32 reference matching the PyTorch module semantics."""
    w1, b1, w2, b2, w3, b3 = params
    h1 = jnp.maximum(x @ w1 + b1, 0.0)
    h2 = jnp.maximum(h1 @ w2 + b2, 0.0)
    return jax.nn.sigmoid(h2 @ w3 + b3)


if __name__ == "__main__":
    key = jax.random.PRNGKey(0)
    kx, kp = jax.random.split(key)

    params = init_params(kp)
    kernel_params = pack_params(params)

    # Small batch, exact tile (grid=(1,), no masking).
    B = 8
    x = jax.random.normal(kx, (B, IN_DIM), jnp.float32)
    out = jax.block_until_ready(decoder_forward(x, kernel_params))
    ref = reference_forward(x, params)
    assert out.shape == (B, OUT)
    # bf16 weights/activations -> loosened tolerance vs. the f32 reference.
    assert jnp.allclose(out, ref, atol=2e-2, rtol=2e-2), "mismatch vs reference (B=8)"

    # Batch that doesn't fill the tile: exercises Pallas' masked partial-block writes.
    B2 = 37
    x2 = jax.random.normal(kx, (B2, IN_DIM), jnp.float32)
    out2 = jax.block_until_ready(decoder_forward(x2, kernel_params))
    ref2 = reference_forward(x2, params)
    assert out2.shape == (B2, OUT)
    assert jnp.allclose(out2, ref2, atol=2e-2, rtol=2e-2), "mismatch vs reference (B=37)"

    print("KERNEL_OK")
</pallas_src>

<mosaic_0001>
module attributes {stable_mosaic.version = 11 : i64} {
  func.func @decoder_kernel(%arg0: i32, %arg1: memref<8x16xf32, #tpu.memory_space<vmem>>, %arg2: memref<16x128xbf16, #tpu.memory_space<vmem>>, %arg3: memref<1x128xf32, #tpu.memory_space<vmem>>, %arg4: memref<128x128xbf16, #tpu.memory_space<vmem>>, %arg5: memref<1x128xf32, #tpu.memory_space<vmem>>, %arg6: memref<128x784xbf16, #tpu.memory_space<vmem>>, %arg7: memref<1x784xf32, #tpu.memory_space<vmem>>, %arg8: memref<8x784xf32, #tpu.memory_space<vmem>>) attributes {dimension_semantics = [#tpu.dimension_semantics<parallel>], iteration_bounds = array<i64: 1>, scalar_prefetch = 0 : i64, scratch_operands = 0 : i64, tpu.core_type = #tpu.core_type<tc>, window_params = [{transform_indices = @transform_0, window_bounds = array<i64: 8, 16>}, {pipeline_mode = #tpu.pipeline_mode<synchronous>, transform_indices = @transform_1, window_bounds = array<i64: 16, 128>}, {pipeline_mode = #tpu.pipeline_mode<synchronous>, transform_indices = @transform_2, window_bounds = array<i64: 1, 128>}, {pipeline_mode = #tpu.pipeline_mode<synchronous>, transform_indices = @transform_3, window_bounds = array<i64: 128, 128>}, {pipeline_mode = #tpu.pipeline_mode<synchronous>, transform_indices = @transform_4, window_bounds = array<i64: 1, 128>}, {pipeline_mode = #tpu.pipeline_mode<synchronous>, transform_indices = @transform_5, window_bounds = array<i64: 128, 784>}, {pipeline_mode = #tpu.pipeline_mode<synchronous>, transform_indices = @transform_6, window_bounds = array<i64: 1, 784>}, {transform_indices = @transform_7, window_bounds = array<i64: 8, 784>}]} {
    %c0 = arith.constant 0 : index
    %c0_0 = arith.constant 0 : index
    %0 = vector.load %arg1[%c0, %c0_0] : memref<8x16xf32, #tpu.memory_space<vmem>>, vector<8x16xf32>
    %1 = arith.truncf %0 : vector<8x16xf32> to vector<8x16xbf16>
    %c0_1 = arith.constant 0 : index
    %c0_2 = arith.constant 0 : index
    %2 = vector.load %arg2[%c0_1, %c0_2] : memref<16x128xbf16, #tpu.memory_space<vmem>>, vector<16x128xbf16>
    %cst = arith.constant dense<0.000000e+00> : vector<8x128xf32>
    %3 = tpu.matmul %1, %2, %cst {dimension_numbers = #tpu.dot_dimension_numbers<[1], [0], [0], [1], [0, 0, 1, 1], [], []>} : vector<8x16xbf16>, vector<16x128xbf16>, vector<8x128xf32> -> vector<8x128xf32>
    %c0_3 = arith.constant 0 : index
    %c0_4 = arith.constant 0 : index
    %4 = vector.load %arg3[%c0_3, %c0_4] : memref<1x128xf32, #tpu.memory_space<vmem>>, vector<1x128xf32>
    %5 = vector.broadcast %4 : vector<1x128xf32> to vector<8x128xf32>
    %6 = arith.addf %3, %5 : vector<8x128xf32>
    %cst_5 = arith.constant 0.000000e+00 : f32
    %7 = vector.broadcast %cst_5 : f32 to vector<8x128xf32>
    %8 = arith.maximumf %6, %7 : vector<8x128xf32>
    %9 = arith.truncf %8 : vector<8x128xf32> to vector<8x128xbf16>
    %c0_6 = arith.constant 0 : index
    %c0_7 = arith.constant 0 : index
    %10 = vector.load %arg4[%c0_6, %c0_7] : memref<128x128xbf16, #tpu.memory_space<vmem>>, vector<128x128xbf16>
    %cst_8 = arith.constant dense<0.000000e+00> : vector<8x128xf32>
    %11 = tpu.matmul %9, %10, %cst_8 {dimension_numbers = #tpu.dot_dimension_numbers<[1], [0], [0], [1], [0, 0, 1, 1], [], []>} : vector<8x128xbf16>, vector<128x128xbf16>, vector<8x128xf32> -> vector<8x128xf32>
    %c0_9 = arith.constant 0 : index
    %c0_10 = arith.constant 0 : index
    %12 = vector.load %arg5[%c0_9, %c0_10] : memref<1x128xf32, #tpu.memory_space<vmem>>, vector<1x128xf32>
    %13 = vector.broadcast %12 : vector<1x128xf32> to vector<8x128xf32>
    %14 = arith.addf %11, %13 : vector<8x128xf32>
    %cst_11 = arith.constant 0.000000e+00 : f32
    %15 = vector.broadcast %cst_11 : f32 to vector<8x128xf32>
    %16 = arith.maximumf %14, %15 : vector<8x128xf32>
    %17 = arith.truncf %16 : vector<8x128xf32> to vector<8x128xbf16>
    %c0_12 = arith.constant 0 : index
    %c0_13 = arith.constant 0 : index
    %18 = vector.load %arg6[%c0_12, %c0_13] : memref<128x784xbf16, #tpu.memory_space<vmem>>, vector<128x784xbf16>
    %cst_14 = arith.constant dense<0.000000e+00> : vector<8x784xf32>
    %19 = tpu.matmul %17, %18, %cst_14 {dimension_numbers = #tpu.dot_dimension_numbers<[1], [0], [0], [1], [0, 0, 1, 1], [], []>} : vector<8x128xbf16>, vector<128x784xbf16>, vector<8x784xf32> -> vector<8x784xf32>
    %c0_15 = arith.constant 0 : index
    %c0_16 = arith.constant 0 : index
    %20 = vector.load %arg7[%c0_15, %c0_16] : memref<1x784xf32, #tpu.memory_space<vmem>>, vector<1x784xf32>
    %21 = vector.broadcast %20 : vector<1x784xf32> to vector<8x784xf32>
    %22 = arith.addf %19, %21 : vector<8x784xf32>
    %23 = arith.negf %22 : vector<8x784xf32>
    %24 = math.exp %23 : vector<8x784xf32>
    %cst_17 = arith.constant 1.000000e+00 : f32
    %25 = vector.broadcast %cst_17 : f32 to vector<8x784xf32>
    %26 = arith.addf %25, %24 : vector<8x784xf32>
    %27 = arith.divf %25, %26 : vector<8x784xf32>
    %c0_18 = arith.constant 0 : index
    %c0_19 = arith.constant 0 : index
    %28 = vector.load %arg8[%c0_18, %c0_19] : memref<8x784xf32, #tpu.memory_space<vmem>>, vector<8x784xf32>
    tpu.vector_store %arg8[%c0_18, %c0_19], %27 {strides = array<i32>} : memref<8x784xf32, #tpu.memory_space<vmem>>, vector<8x784xf32>,
    return
  }
  func.func @transform_0(%arg0: i32) -> (i32, i32) {
    %c0_i32 = arith.constant 0 : i32
    %c0_i32_0 = arith.constant 0 : i32
    return %arg0, %c0_i32 : i32, i32
  }
  func.func @transform_1(%arg0: i32) -> (i32, i32) {
    %c0_i32 = arith.constant 0 : i32
    %c0_i32_0 = arith.constant 0 : i32
    %c0_i32_1 = arith.constant 0 : i32
    return %c0_i32, %c0_i32_0 : i32, i32
  }
  func.func @transform_2(%arg0: i32) -> (i32, i32) {
    %c0_i32 = arith.constant 0 : i32
    %c0_i32_0 = arith.constant 0 : i32
    %c0_i32_1 = arith.constant 0 : i32
    return %c0_i32, %c0_i32_0 : i32, i32
  }
  func.func @transform_3(%arg0: i32) -> (i32, i32) {
    %c0_i32 = arith.constant 0 : i32
    %c0_i32_0 = arith.constant 0 : i32
    %c0_i32_1 = arith.constant 0 : i32
    return %c0_i32, %c0_i32_0 : i32, i32
  }
  func.func @transform_4(%arg0: i32) -> (i32, i32) {
    %c0_i32 = arith.constant 0 : i32
    %c0_i32_0 = arith.constant 0 : i32
    %c0_i32_1 = arith.constant 0 : i32
    return %c0_i32, %c0_i32_0 : i32, i32
  }
  func.func @transform_5(%arg0: i32) -> (i32, i32) {
    %c0_i32 = arith.constant 0 : i32
    %c0_i32_0 = arith.constant 0 : i32
    %c0_i32_1 = arith.constant 0 : i32
    return %c0_i32, %c0_i32_0 : i32, i32
  }
  func.func @transform_6(%arg0: i32) -> (i32, i32) {
    %c0_i32 = arith.constant 0 : i32
    %c0_i32_0 = arith.constant 0 : i32
    %c0_i32_1 = arith.constant 0 : i32
    return %c0_i32, %c0_i32_0 : i32, i32
  }
  func.func @transform_7(%arg0: i32) -> (i32, i32) {
    %c0_i32 = arith.constant 0 : i32
    %c0_i32_0 = arith.constant 0 : i32
    return %arg0, %c0_i32 : i32, i32
  }
}

</mosaic_0001>

<bundles_post_ra>
// kernel: decoder_forward.1
= control target key start
LH: loop header
LB: loop body
LE: loop exit
PB: predicated region body
PF: predicated region fallthrough
CT: control target
= control target key end

     0   :  { %vm42_vm0 = vcmask 130048   ;;  %s1600_s0 = inlined_call_operand.vmem [shape: f32[8,16], index: 0, kind: input, shape index: {}]   ;;  %s1601_s1 = inlined_call_operand.vmem [shape: bf16[16,128], index: 1, kind: input, shape index: {}]   ;;  %s1602_s2 = inlined_call_operand.vmem [shape: f32[1,128], index: 2, kind: input, shape index: {}]   ;;  %s1603_s3 = inlined_call_operand.vmem [shape: bf16[128,128], index: 3, kind: input, shape index: {}]   ;;  %s1604_s4 = inlined_call_operand.vmem [shape: f32[1,128], index: 4, kind: input, shape index: {}]   ;;  %s1605_s5 = inlined_call_operand.vmem [shape: bf16[128,784], index: 5, kind: input, shape index: {}]   ;;  %s1606_s6 = inlined_call_operand.vmem [shape: f32[1,784], index: 6, kind: input, shape index: {}]   ;;  %s1607_s7 = inlined_call_operand.hbm [shape: f32[8,784], index: 7, kind: output, shape index: {}]  }
   0x1   :  { %v1027_v0 = vld [vmem:[%s1601_s1] sm:$0xff]  ;;  %v1035_v2 = vld [vmem:[%s1603_s3 + $0x38] sm:$0xff]  ;;  %v1034_v4 = vld [vmem:[%s1603_s3 + $0x30] sm:$0xff] }
   0x2   :  { %v28_v1 = vld [vmem:[%s1600_s0] sm:$0xff]  ;;  %53 = vmatpush.bf16.msra.mxu0 %v1027_v0  ;;  %129 = vmatpush.bf16.msra.mxu1 %v1035_v2 }
   0x3   :  { %v29_v3 = vpack.c.bf16 %v28_v1, %v28_v1 }
   0x4   :  { %12 = vsyncpa [#allocation3], 0  ;;  %v1033_v5 = vld [vmem:[%s1603_s3 + $0x28] sm:$0xff]  ;;  %v1032_v6 = vld [vmem:[%s1603_s3 + $0x20] sm:$0xff] }
   0x5   :  { %763 = vmatmul.msk.bf16.vlgmr.msra.gmra.mxu0 %vm42_vm0, %v29_v3  ;;  %v1031_v7 = vld [vmem:[%s1603_s3 + $0x18] sm:$0xff]  ;;  %v1030_v8 = vld [vmem:[%s1603_s3 + $0x10] sm:$0xff]  ;;  %v1029_v9 = vld [vmem:[%s1603_s3 + $0x8] sm:$0xff] }
   0x6   :  { %130 = vmatpush.bf16.msra.mxu1 %v1034_v4  ;;  %v1028_v10 = vld [vmem:[%s1603_s3] sm:$0xff]  ;;  %v994_v11 = vld [vmem:[%s1605_s5 + $0x188] sm:$0xf]  ;;  %v1085_v13 = vld [vmem:[%s1605_s5 + $0x18c] sm:$0xf] }
   0x7   :  { %v1088_v12 = vld [vmem:[%s1605_s5 + $0x1a0] sm:$0xf0]  ;;  %v996_v15 = vld [vmem:[%s1605_s5 + $0x1a4] sm:$0xf0]  ;;  %v1002_v16 = vld [vmem:[%s1605_s5 + $0x190] sm:$0xf] }
   0x8   :  { %v995_v14 = vor.u32 %v1088_v12, %v994_v11  ;;  %v1089_v17 = vld [vmem:[%s1605_s5 + $0x1a8] sm:$0xf0]  ;;  %v999_v18 = vor.u32 %v1085_v13, %v996_v15  ;;  %v966_v20 = vld [vmem:[%s1605_s5 + $0x150] sm:$0xf]  ;;  %v1078_v22 = vld [vmem:[%s1605_s5 + $0x154] sm:$0xf] }
   0x9   :  { %v1003_v19 = vor.u32 %v1089_v17, %v1002_v16  ;;  %v1081_v21 = vld [vmem:[%s1605_s5 + $0x168] sm:$0xf0]  ;;  %v968_v24 = vld [vmem:[%s1605_s5 + $0x16c] sm:$0xf0]  ;;  %v974_v25 = vld [vmem:[%s1605_s5 + $0x158] sm:$0xf] }
   0xa   :  { %131 = vmatpush.bf16.msra.mxu1 %v1033_v5  ;;  %512 = vmatpush.bf16.msra.mxu2 %v995_v14  ;;  %v967_v23 = vor.u32 %v1081_v21, %v966_v20  ;;  %v1082_v26 = vld [vmem:[%s1605_s5 + $0x170] sm:$0xf0]  ;;  %v971_v27 = vor.u32 %v1078_v22, %v968_v24  ;;  %v938_v29 = vld [vmem:[%s1605_s5 + $0x118] sm:$0xf]  ;;  %v1071_v31 = vld [vmem:[%s1605_s5 + $0x11c] sm:$0xf] }
   0xb   :  { %525 = vmatpush.bf16.msra.mxu3 %v999_v18  ;;  %538 = vmatpush.bf16.msrb.mxu0 %v1003_v19  ;;  %v975_v28 = vor.u32 %v1082_v26, %v974_v25  ;;  %v1074_v30 = vld [vmem:[%s1605_s5 + $0x130] sm:$0xf0]  ;;  %v940_v32 = vld [vmem:[%s1605_s5 + $0x134] sm:$0xf0]  ;;  %v946_v33 = vld [vmem:[%s1605_s5 + $0x120] sm:$0xf] }
   0xc   :  { %v1075_v34 = vld [vmem:[%s1605_s5 + $0x138] sm:$0xf0]  ;;  %v939_v35 = vor.u32 %v1074_v30, %v938_v29  ;;  %v910_v36 = vld [vmem:[%s1605_s5 + $0xe0] sm:$0xf]  ;;  %v943_v38 = vor.u32 %v1071_v31, %v940_v32  ;;  %v1064_v40 = vld [vmem:[%s1605_s5 + $0xe4] sm:$0xf] }
   0xd   :  { %v1067_v37 = vld [vmem:[%s1605_s5 + $0xf8] sm:$0xf0]  ;;  %v947_v39 = vor.u32 %v1075_v34, %v946_v33  ;;  %v1086_v41 = vld [vmem:[%s1605_s5 + $0x194] sm:$0xf]  ;;  %v1004_v42 = vld [vmem:[%s1605_s5 + $0x1ac] sm:$0xf0] }
   0xe   :  { %132 = vmatpush.bf16.msra.mxu1 %v1032_v6  ;;  %513 = vmatpush.bf16.msra.mxu2 %v967_v23  ;;  %v912_v43 = vld [vmem:[%s1605_s5 + $0xfc] sm:$0xf0]  ;;  %v918_v44 = vld [vmem:[%s1605_s5 + $0xe8] sm:$0xf]  ;;  %v1068_v45 = vld [vmem:[%s1605_s5 + $0x100] sm:$0xf0]  ;;  %v1007_v46 = vor.u32 %v1086_v41, %v1004_v42  ;;  %v911_v48 = vor.u32 %v1067_v37, %v910_v36 }
   0xf   :  { %526 = vmatpush.bf16.msra.mxu3 %v971_v27  ;;  %539 = vmatpush.bf16.msrb.mxu0 %v975_v28  ;;  %v1079_v47 = vld [vmem:[%s1605_s5 + $0x15c] sm:$0xf]  ;;  %v882_v49 = vld [vmem:[%s1605_s5 + $0xa8] sm:$0xf]  ;;  %v1060_v50 = vld [vmem:[%s1605_s5 + $0xc0] sm:$0xf0]  ;;  %v915_v52 = vor.u32 %v1064_v40, %v912_v43  ;;  %v919_v53 = vor.u32 %v1068_v45, %v918_v44 }
  0x10   :  { %v976_v51 = vld [vmem:[%s1605_s5 + $0x174] sm:$0xf0]  ;;  %v1057_v54 = vld [vmem:[%s1605_s5 + $0xac] sm:$0xf]  ;;  %v884_v55 = vld [vmem:[%s1605_s5 + $0xc4] sm:$0xf0]  ;;  %v883_v61 = vor.u32 %v1060_v50, %v882_v49 }
  0x11   :  { %v890_v56 = vld [vmem:[%s1605_s5 + $0xb0] sm:$0xf]  ;;  %v979_v57 = vor.u32 %v1079_v47, %v976_v51  ;;  %v1061_v58 = vld [vmem:[%s1605_s5 + $0xc8] sm:$0xf0]  ;;  %v1072_v59 = vld [vmem:[%s1605_s5 + $0x124] sm:$0xf]  ;;  %v887_v1 = vor.u32 %v1057_v54, %v884_v55 }
  0x12   :  { %133 = vmatpush.bf16.msra.mxu1 %v1031_v7  ;;  %514 = vmatpush.bf16.msra.mxu2 %v939_v35  ;;  %v948_v60 = vld [vmem:[%s1605_s5 + $0x13c] sm:$0xf0]  ;;  %v854_v62 = vld [vmem:[%s1605_s5 + $0x70] sm:$0xf]  ;;  %v1053_v63 = vld [vmem:[%s1605_s5 + $0x88] sm:$0xf0]  ;;  %v891_v2 = vor.u32 %v1061_v58, %v890_v56 }
  0x13   :  { %527 = vmatpush.bf16.msra.mxu3 %v943_v38  ;;  %540 = vmatpush.bf16.msrb.mxu0 %v947_v39  ;;  %v951_v0 = vor.u32 %v1072_v59, %v948_v60  ;;  %v1050_v3 = vld [vmem:[%s1605_s5 + $0x74] sm:$0xf]  ;;  %v1065_v4 = vld [vmem:[%s1605_s5 + $0xec] sm:$0xf]  ;;  %v920_v5 = vld [vmem:[%s1605_s5 + $0x104] sm:$0xf0] }
  0x14   :  { %v856_v6 = vld [vmem:[%s1605_s5 + $0x8c] sm:$0xf0]  ;;  %v862_v7 = vld [vmem:[%s1605_s5 + $0x78] sm:$0xf]  ;;  %v1046_v12 = vld [vmem:[%s1605_s5 + $0x50] sm:$0xf0]  ;;  %v923_v13 = vor.u32 %v1065_v4, %v920_v5 }
  0x15   :  { %v826_v11 = vld [vmem:[%s1605_s5 + $0x38] sm:$0xf]  ;;  %v859_v14 = vor.u32 %v1050_v3, %v856_v6  ;;  %v1043_v16 = vld [vmem:[%s1605_s5 + $0x3c] sm:$0xf]  ;;  %v1058_v17 = vld [vmem:[%s1605_s5 + $0xb4] sm:$0xf] }
  0x16   :  { %134 = vmatpush.bf16.msra.mxu1 %v1030_v8  ;;  %515 = vmatpush.bf16.msra.mxu2 %v911_v48  ;;  %v1054_v8 = vld [vmem:[%s1605_s5 + $0x90] sm:$0xf0]  ;;  %v892_v18 = vld [vmem:[%s1605_s5 + $0xcc] sm:$0xf0]  ;;  %v828_v19 = vld [vmem:[%s1605_s5 + $0x54] sm:$0xf0]  ;;  %v827_v22 = vor.u32 %v1046_v12, %v826_v11 }
  0x17   :  { %528 = vmatpush.bf16.msra.mxu3 %v915_v52  ;;  %541 = vmatpush.bf16.msrb.mxu0 %v919_v53  ;;  %v863_v15 = vor.u32 %v1054_v8, %v862_v7  ;;  %v834_v20 = vld [vmem:[%s1605_s5 + $0x40] sm:$0xf]  ;;  %v1047_v21 = vld [vmem:[%s1605_s5 + $0x58] sm:$0xf0]  ;;  %v1036_v25 = vld [vmem:[%s1605_s5 + $0x4] sm:$0xf]  ;;  %v895_v26 = vor.u32 %v1058_v17, %v892_v18  ;;  %v831_v28 = vor.u32 %v1043_v16, %v828_v19 }
  0x18   :  { %v798_v23 = vld [vmem:[%s1605_s5] sm:$0xf]  ;;  %v1039_v24 = vld [vmem:[%s1605_s5 + $0x18] sm:$0xf0]  ;;  %v835_v29 = vor.u32 %v1047_v21, %v834_v20  ;;  %v806_v31 = vld [vmem:[%s1605_s5 + $0x8] sm:$0xf] }
  0x19   :  { %v800_v30 = vld [vmem:[%s1605_s5 + $0x1c] sm:$0xf0]  ;;  %v1040_v32 = vld [vmem:[%s1605_s5 + $0x20] sm:$0xf0]  ;;  %v1010_v34 = vld [vmem:[%s1605_s5 + $0x198] sm:$0xf]  ;;  %v799_v41 = vor.u32 %v1039_v24, %v798_v23 }
  0x1a   :  { %135 = vmatpush.bf16.msra.mxu1 %v1029_v9  ;;  %v1093_v9 = vld [vmem:[%s1602_s2] ss:$0 sm:$0xff]  ;;  %516 = vmatpush.bf16.msra.mxu2 %v883_v61  ;;  %v1090_v35 = vld [vmem:[%s1605_s5 + $0x1b0] sm:$0xf0]  ;;  %v1087_v36 = vld [vmem:[%s1605_s5 + $0x19c] sm:$0xf]  ;;  %v803_v44 = vor.u32 %v1036_v25, %v800_v30  ;;  %v807_v45 = vor.u32 %v1040_v32, %v806_v31 }
  0x1b   :  { %529 = vmatpush.bf16.msra.mxu3 %v887_v1  ;;  %542 = vmatpush.bf16.msrb.mxu0 %v891_v2  ;;  %v1012_v37 = vld [vmem:[%s1605_s5 + $0x1b4] sm:$0xf0]  ;;  %v1018_v38 = vld [vmem:[%s1605_s5 + $0x1a0] sm:$0xf]  ;;  %v1091_v39 = vld [vmem:[%s1605_s5 + $0x1b8] sm:$0xf0]  ;;  %v1011_v47 = vor.u32 %v1090_v35, %v1010_v34 }
  0x1c   :  { %v1051_v42 = vld [vmem:[%s1605_s5 + $0x7c] sm:$0xf]  ;;  %v864_v43 = vld [vmem:[%s1605_s5 + $0x94] sm:$0xf0]  ;;  %v1015_v48 = vor.u32 %v1087_v36, %v1012_v37  ;;  %v982_v49 = vld [vmem:[%s1605_s5 + $0x160] sm:$0xf]  ;;  %v1019_v50 = vor.u32 %v1091_v39, %v1018_v38 }
  0x1d   :  { %v867_v51 = vor.u32 %v1051_v42, %v864_v43  ;;  %v1083_v52 = vld [vmem:[%s1605_s5 + $0x178] sm:$0xf0]  ;;  %v1080_v53 = vld [vmem:[%s1605_s5 + $0x164] sm:$0xf]  ;;  %v984_v54 = vld [vmem:[%s1605_s5 + $0x17c] sm:$0xf0] }
  0x1e   :  { %136 = vmatpush.bf16.msra.mxu1 %v1028_v10  ;;  %v855_v10 = vor.u32 %v1053_v63, %v854_v62  ;;  %v990_v55 = vld [vmem:[%s1605_s5 + $0x168] sm:$0xf]  ;;  %v1084_v56 = vld [vmem:[%s1605_s5 + $0x180] sm:$0xf0]  ;;  %v983_v58 = vor.u32 %v1083_v52, %v982_v49  ;;  %v987_v59 = vor.u32 %v1080_v53, %v984_v54  ;;  %v836_v62 = vld [vmem:[%s1605_s5 + $0x5c] sm:$0xf0] }
  0x1f   :  { %530 = vmatpush.bf16.msra.mxu3 %v859_v14  ;;  %543 = vmatpush.bf16.msrb.mxu0 %v863_v15  ;;  %v991_v60 = vor.u32 %v1084_v56, %v990_v55  ;;  %v1044_v61 = vld [vmem:[%s1605_s5 + $0x44] sm:$0xf]  ;;  %v954_v63 = vld [vmem:[%s1605_s5 + $0x128] sm:$0xf]  ;;  %v1073_v2 = vld [vmem:[%s1605_s5 + $0x12c] sm:$0xf] }
  0x20   :  { %517 = vmatpush.bf16.msra.mxu2 %v855_v10  ;;  %v1076_v1 = vld [vmem:[%s1605_s5 + $0x140] sm:$0xf0]  ;;  %v956_v3 = vld [vmem:[%s1605_s5 + $0x144] sm:$0xf0]  ;;  %v962_v6 = vld [vmem:[%s1605_s5 + $0x130] sm:$0xf] }
  0x21   :  { %v955_v4 = vor.u32 %v1076_v1, %v954_v63  ;;  %v959_v5 = vor.u32 %v1073_v2, %v956_v3  ;;  %v1077_v7 = vld [vmem:[%s1605_s5 + $0x148] sm:$0xf0]  ;;  %v808_v10 = vld [vmem:[%s1605_s5 + $0x24] sm:$0xf0]  ;;  %v926_v11 = vld [vmem:[%s1605_s5 + $0xf0] sm:$0xf] }
  0x22   :  { %551 = vmatpush.bf16.msrb.mxu1 %v1007_v46  ;;  %v963_v8 = vor.u32 %v1077_v7, %v962_v6  ;;  %v1066_v14 = vld [vmem:[%s1605_s5 + $0xf4] sm:$0xf]  ;;  %v928_v15 = vld [vmem:[%s1605_s5 + $0x10c] sm:$0xf0]  ;;  %v934_v18 = vld [vmem:[%s1605_s5 + $0xf8] sm:$0xf] }
  0x23   :  { %531 = vmatpush.bf16.msra.mxu3 %v831_v28  ;;  %544 = vmatpush.bf16.msrb.mxu0 %v835_v29  ;;  %v931_v17 = vor.u32 %v1066_v14, %v928_v15  ;;  %v1070_v19 = vld [vmem:[%s1605_s5 + $0x110] sm:$0xf0]  ;;  %v898_v21 = vld [vmem:[%s1605_s5 + $0xb8] sm:$0xf]  ;;  %v1059_v23 = vld [vmem:[%s1605_s5 + $0xbc] sm:$0xf] }
  0x24   :  { %518 = vmatpush.bf16.msra.mxu2 %v827_v22  ;;  %v935_v20 = vor.u32 %v1070_v19, %v934_v18  ;;  %v1062_v22 = vld [vmem:[%s1605_s5 + $0xd0] sm:$0xf0]  ;;  %v900_v25 = vld [vmem:[%s1605_s5 + $0xd4] sm:$0xf0]  ;;  %v870_v30 = vld [vmem:[%s1605_s5 + $0x80] sm:$0xf] }
  0x25   :  { %v899_v24 = vor.u32 %v1062_v22, %v898_v21  ;;  %v903_v28 = vor.u32 %v1059_v23, %v900_v25  ;;  %v1055_v31 = vld [vmem:[%s1605_s5 + $0x98] sm:$0xf0]  ;;  %v1052_v32 = vld [vmem:[%s1605_s5 + $0x84] sm:$0xf]  ;;  %v872_v34 = vld [vmem:[%s1605_s5 + $0x9c] sm:$0xf0] }
  0x26   :  { %552 = vmatpush.bf16.msrb.mxu1 %v979_v57  ;;  %v878_v35 = vld [vmem:[%s1605_s5 + $0x88] sm:$0xf]  ;;  %v1056_v36 = vld [vmem:[%s1605_s5 + $0xa0] sm:$0xf0]  ;;  %v875_v37 = vor.u32 %v1052_v32, %v872_v34  ;;  %v850_v43 = vld [vmem:[%s1605_s5 + $0x50] sm:$0xf] }
  0x27   :  { %532 = vmatpush.bf16.msra.mxu3 %v803_v44  ;;  %545 = vmatpush.bf16.msrb.mxu0 %v807_v45  ;;  %v879_v38 = vor.u32 %v1056_v36, %v878_v35  ;;  %v842_v39 = vld [vmem:[%s1605_s5 + $0x48] sm:$0xf]  ;;  %v1049_v44 = vld [vmem:[%s1605_s5 + $0x68] sm:$0xf0]  ;;  %v822_v52 = vld [vmem:[%s1605_s5 + $0x18] sm:$0xf] }
  0x28   :  { %519 = vmatpush.bf16.msra.mxu2 %v799_v41  ;;  %v1045_v41 = vld [vmem:[%s1605_s5 + $0x4c] sm:$0xf]  ;;  %v844_v42 = vld [vmem:[%s1605_s5 + $0x64] sm:$0xf0]  ;;  %v1042_v53 = vld [vmem:[%s1605_s5 + $0x30] sm:$0xf0] }
  0x29   :  { %v1041_v49 = vld [vmem:[%s1605_s5 + $0x28] sm:$0xf0]  ;;  %v823_v56 = vor.u32 %v1042_v53, %v822_v52  ;;  %v208_v63 = vld [vmem:[%s1606_s6] sm:$0x7f]  ;;  %s750_s2 = sshll.u32 %s1607_s7, 4  ;;  %s751_s2 = int_to_ptr.hbm [resolvable:$true] %s750_s2 }
  0x2a   :  { %553 = vmatpush.bf16.msrb.mxu1 %v951_v0  ;;  %v839_v0 = vor.u32 %v1044_v61, %v836_v62  ;;  %v213_v1 = vperm.slane %v208_v63, 3  ;;  %v210_v6 = vperm.slane %v208_v63, 0  ;;  %v211_v7 = vperm.slane %v208_v63, 1 }
  0x2b   :  { %577 = vmatpush.bf16.msrb.mxu3 %v1015_v48  ;;  %590 = vmatpush.bf16.msra.mxu0 %v1019_v50  ;;  %v814_v48 = vld [vmem:[%s1605_s5 + $0x10] sm:$0xf]  ;;  %v1038_v50 = vld [vmem:[%s1605_s5 + $0x14] sm:$0xf]  ;;  %v215_v32 = vperm.slane %v208_v63, 5 }
  0x2c   :  { %564 = vmatpush.bf16.msrb.mxu2 %v1011_v47  ;;  %v851_v47 = vor.u32 %v1049_v44, %v850_v43  ;;  %v815_v54 = vor.u32 %v1041_v49, %v814_v48 }
  0x2e   :  { %554 = vmatpush.bf16.msrb.mxu1 %v923_v13  ;;  %v1069_v13 = vld [vmem:[%s1605_s5 + $0x108] sm:$0xf0] }
  0x2f   :  { %578 = vmatpush.bf16.msrb.mxu3 %v987_v59  ;;  %591 = vmatpush.bf16.msra.mxu0 %v991_v60  ;;  %v927_v16 = vor.u32 %v1069_v13, %v926_v11 }
  0x30   :  { %565 = vmatpush.bf16.msrb.mxu2 %v983_v58 }
  0x32   :  { %555 = vmatpush.bf16.msrb.mxu1 %v895_v26  ;;  %v906_v26 = vld [vmem:[%s1605_s5 + $0xc0] sm:$0xf] }
  0x33   :  { %579 = vmatpush.bf16.msrb.mxu3 %v959_v5  ;;  %592 = vmatpush.bf16.msra.mxu0 %v963_v8 }
  0x34   :  { %566 = vmatpush.bf16.msrb.mxu2 %v955_v4 }
  0x36   :  { %556 = vmatpush.bf16.msrb.mxu1 %v867_v51  ;;  %v816_v51 = vld [vmem:[%s1605_s5 + $0x2c] sm:$0xf0] }
  0x37   :  { %580 = vmatpush.bf16.msrb.mxu3 %v931_v17  ;;  %593 = vmatpush.bf16.msra.mxu0 %v935_v20  ;;  %v819_v55 = vor.u32 %v1038_v50, %v816_v51 }
  0x38   :  { %567 = vmatpush.bf16.msrb.mxu2 %v927_v16 }
  0x3a   :  { %557 = vmatpush.bf16.msrb.mxu1 %v839_v0  ;;  %v212_v0 = vperm.slane %v208_v63, 2 }
  0x3b   :  { %581 = vmatpush.bf16.msrb.mxu3 %v903_v28 }
  0x3c   :  { %568 = vmatpush.bf16.msrb.mxu2 %v899_v24  ;;  %v216_v24 = vperm.slane %v208_v63, 6 }
  0x3f   :  { %582 = vmatpush.bf16.msrb.mxu3 %v875_v37 }
  0x82   :  { %v55_v27 = vpop.f32.mrf.mxu0 }
  0x83   :  { %v56_v33 = vadd.f32 %v1093_v9, %v55_v27  ;;  %v1037_v9 = vld [vmem:[%s1605_s5 + $0xc] sm:$0xf]  ;;  %v1063_v27 = vld [vmem:[%s1605_s5 + $0xd8] sm:$0xf0] }
  0x84   :  { %v811_v12 = vor.u32 %v1037_v9, %v808_v10  ;;  %v907_v29 = vor.u32 %v1063_v27, %v906_v26 }
  0x85   :  { %v59_v40 = vmax.f32 %v56_v33, 0.0  ;;  %v871_v33 = vor.u32 %v1055_v31, %v870_v30  ;;  %v214_v31 = vperm.slane %v208_v63, 4 }
  0x86   :  { %558 = vmatpush.bf16.msrb.mxu1 %v811_v12  ;;  %594 = vmatpush.bf16.msra.mxu0 %v907_v29 }
  0x87   :  { %v60_v46 = vpack.c.bf16 %v59_v40, %v59_v40  ;;  %v1048_v40 = vld [vmem:[%s1605_s5 + $0x60] sm:$0xf0]  ;;  %569 = vmatpush.bf16.msrb.mxu2 %v871_v33 }
  0x88   :  { %v843_v45 = vor.u32 %v1048_v40, %v842_v39 }
  0x89   :  { %137 = vmatmul.bf16.vlgmr.msra.gmra.mxu1 %v60_v46  ;;  %v847_v46 = vor.u32 %v1045_v41, %v844_v42 }
  0x8a   :  { %v57_v57 = vpop.f32.mrf.mxu0  ;;  %595 = vmatpush.bf16.msra.mxu0 %v879_v38 }
  0x8b   :  { %570 = vmatpush.bf16.msrb.mxu2 %v843_v45  ;;  %583 = vmatpush.bf16.msrb.mxu3 %v847_v46  ;;  %v1094_v57 = vld [vmem:[%s1604_s4] ss:$0 sm:$0xff]  ;;  %s1149_s4 = smov [#allocation2]  }
  0x8c   :  { %s748_s6 = sshll.u32 %s1149_s4, 4  ;;  %s749_s6 = int_to_ptr.vmem [resolvable:$true] %s748_s6 }
  0x8e   :  { %596 = vmatpush.bf16.msra.mxu0 %v851_v47 }
  0x8f   :  { %571 = vmatpush.bf16.msrb.mxu2 %v815_v54  ;;  %584 = vmatpush.bf16.msrb.mxu3 %v819_v55 }
  0x92   :  { %597 = vmatpush.bf16.msra.mxu0 %v823_v56 }
 0x106   :  { %v138_v58 = vpop.f32.mrf.mxu1 }
 0x107   :  { %v139_v59 = vadd.f32 %v1094_v57, %v138_v58 }
 0x109   :  { %v142_v60 = vmax.f32 %v139_v59, 0.0 }
 0x10b   :  { %v143_v61 = vpack.c.bf16 %v142_v60, %v142_v60 }
 0x10d   :  { %520 = vmatmul.bf16.vlgmr.msra.gmra.mxu2 %v143_v61  ;;  %533 = vmatmul.bf16.vlgmr.msra.gmra.mxu3 %v143_v61 }
 0x10e   :  { %546 = vmatmul.bf16.vlgmr.msrb.gmra.mxu0 %v143_v61  ;;  %559 = vmatmul.bf16.vlgmr.msrb.gmra.mxu1 %v143_v61  ;;  %v140_v62 = vpop.f32.mrf.mxu1 }
 0x11d   :  { %572 = vmatmul.bf16.vlgmr.msrb.gmra.mxu2 %v143_v61  ;;  %585 = vmatmul.bf16.vlgmr.msrb.gmra.mxu3 %v143_v61 }
 0x11e   :  { %598 = vmatmul.bf16.vlgmr.msra.gmra.mxu0 %v143_v61 }
 0x18b   :  { %v547_v2 = vpop.f32.mrf.mxu0  ;;  %v560_v3 = vpop.f32.mrf.mxu1 }
 0x18c   :  { %v548_v4 = vadd.f32 %v547_v2, %v212_v0  ;;  %v561_v5 = vadd.f32 %v560_v3, %v213_v1 }
 0x18e   :  { %v1022_v8 = vmul.f32 -1.442695, %v548_v4  ;;  %v1023_v9 = vmul.f32 -1.442695, %v561_v5 }
 0x190   :  { %1095 = vpow2.f32 %v1022_v8  ;;  %v521_v10 = vpop.f32.mrf.mxu2  ;;  %v534_v11 = vpop.f32.mrf.mxu3 }
 0x191   :  { %1097 = vpow2.f32 %v1023_v9  ;;  %v522_v12 = vadd.f32 %v521_v10, %v210_v6  ;;  %v535_v13 = vadd.f32 %v534_v11, %v211_v7 }
 0x193   :  { %v1020_v14 = vmul.f32 -1.442695, %v522_v12  ;;  %v1021_v15 = vmul.f32 -1.442695, %v535_v13  ;;  %v549_v16 = vpop.f32.mrf.mxu0  ;;  %v562_v17 = vpop.f32.mrf.mxu1 }
 0x195   :  { %1099 = vpow2.f32 %v1020_v14 }
 0x196   :  { %v1096_v18 = vpop.eup %1095  ;;  %1101 = vpow2.f32 %v1021_v15 }
 0x197   :  { %v1098_v19 = vpop.eup %1097  ;;  %v626_v20 = vadd.f32 1.0, %v1096_v18 }
 0x198   :  { %v627_v21 = vadd.f32 1.0, %v1098_v19  ;;  %v523_v22 = vpop.f32.mrf.mxu2  ;;  %v536_v23 = vpop.f32.mrf.mxu3 }
 0x199   :  { %1103 = vrcp.f32 %v626_v20  ;;  %v670_v34 = vand.u32 2147483647, %v626_v20  ;;  %v672_v35 = vand.u32 2147483648, %v626_v20  ;;  %vm666_vm1 = vweird.f32 %v626_v20 }
 0x19a   :  { %1105 = vrcp.f32 %v627_v21  ;;  %vm681_vm2 = vweird.f32 %v627_v21  ;;  %v685_v41 = vand.u32 2147483647, %v627_v21  ;;  %v687_v42 = vand.u32 2147483648, %v627_v21 }
 0x19b   :  { %v1100_v25 = vpop.eup %1099  ;;  %v599_v26 = vpop.f32.mrf.mxu0  ;;  %vm1572_vm4 = vcmp.eq.f32.partialorder %v670_v34, 8.507059e+37  ;;  %v673_v48 = vor.u32 1.1754944e-38, %v672_v35 }
 0x19c   :  { %v1102_v27 = vpop.eup %1101  ;;  %v1566_v28 = vadd.f32 1.0, %v1100_v25  ;;  %v600_v30 = vadd.f32 %v599_v26, %v216_v24  ;;  %vm1576_vm6 = vcmp.eq.f32.partialorder %v685_v41, 8.507059e+37  ;;  %v688_v60 = vor.u32 1.1754944e-38, %v687_v42 }
 0x19d   :  { %v1568_v29 = vadd.f32 1.0, %v1102_v27 }
 0x19e   :  { %1107 = vrcp.f32 %v1566_v28  ;;  %v1026_v44 = vmul.f32 -1.442695, %v600_v30  ;;  %v640_v0 = vand.u32 2147483647, %v1566_v28  ;;  %v642_v2 = vand.u32 2147483648, %v1566_v28 }
 0x19f   :  { %v1104_v33 = vpop.eup %1103  ;;  %1109 = vrcp.f32 %v1568_v29  ;;  %v657_v4 = vand.u32 2147483648, %v1568_v29  ;;  %v655_v13 = vand.u32 2147483647, %v1568_v29  ;;  %vm636_vm11 = vweird.f32 %v1566_v28 }
 0x1a0   :  { %v1106_v36 = vpop.eup %1105  ;;  %v662_v37 = vmul.f32 %v1104_v33, %v626_v20  ;;  %v573_v38 = vpop.f32.mrf.mxu2  ;;  %vm667_vm3 = vweird.f32 %v1104_v33  ;;  %1111 = vpow2.f32 %v1026_v44  ;;  %v643_v17 = vor.u32 1.1754944e-38, %v642_v2 }
 0x1a1   :  { %v586_v39 = vpop.f32.mrf.mxu3  ;;  %v677_v40 = vmul.f32 %v1106_v36, %v627_v21  ;;  %v574_v45 = vadd.f32 %v573_v38, %v214_v31  ;;  %vm682_vm5 = vweird.f32 %v1106_v36  ;;  %vm668_vm7 = vmor %vm666_vm1, %vm667_vm3  ;;  %vm651_vm13 = vweird.f32 %v1568_v29 }
 0x1a2   :  { %v663_v43 = vsub.f32 1.0, %v662_v37  ;;  %v587_v46 = vadd.f32 %v586_v39, %v215_v32  ;;  %vm683_vm8 = vmor %vm681_vm2, %vm682_vm5  ;;  %vm641_vm14 = vcmp.eq.f32.partialorder %v640_v0, 8.507059e+37  ;;  %v658_v21 = vor.u32 1.1754944e-38, %v657_v4 }
 0x1a3   :  { %v678_v49 = vsub.f32 1.0, %v677_v40  ;;  %v601_v50 = vpop.f32.mrf.mxu0  ;;  %v1024_v53 = vmul.f32 -1.442695, %v574_v45  ;;  %vm656_vm1 = vcmp.eq.f32.partialorder %v655_v13, 8.507059e+37 }
 0x1a4   :  { %v1108_v51 = vpop.eup %1107  ;;  %v664_v52 = vmul.f32 %v1104_v33, %v663_v43  ;;  %v1025_v54 = vmul.f32 -1.442695, %v587_v46 }
 0x1a5   :  { %v1110_v55 = vpop.eup %1109  ;;  %v679_v56 = vmul.f32 %v1106_v36, %v678_v49  ;;  %v632_v58 = vmul.f32 %v1108_v51, %v1566_v28  ;;  %1113 = vpow2.f32 %v1024_v53  ;;  %vm637_vm9 = vweird.f32 %v1108_v51 }
 0x1a6   :  { %v665_v59 = vadd.f32 %v1104_v33, %v664_v52  ;;  %v647_v61 = vmul.f32 %v1110_v55, %v1568_v29  ;;  %1115 = vpow2.f32 %v1025_v54  ;;  %v1112_v10 = vpop.eup %1111  ;;  %vm652_vm10 = vweird.f32 %v1110_v55  ;;  %vm638_vm12 = vmor %vm636_vm11, %vm637_vm9 }
 0x1a7   :  { %v680_v62 = vadd.f32 %v1106_v36, %v679_v56  ;;  %v633_v63 = vsub.f32 1.0, %v632_v58  ;;  %v630_v15 = vadd.f32 1.0, %v1112_v10  ;;  %vm653_vm15 = vmor %vm651_vm13, %vm652_vm10 }
 0x1a8   :  { %v669_v1 = vsel %vm668_vm7, %v1104_v33, %v665_v59  ;;  %v648_v3 = vsub.f32 1.0, %v647_v61  ;;  %v575_v5 = vpop.f32.mrf.mxu2 }
 0x1a9   :  { %v588_v6 = vpop.f32.mrf.mxu3  ;;  %v674_v7 = vsel %vm1572_vm4, %v673_v48, %v669_v1  ;;  %v684_v8 = vsel %vm683_vm8, %v1106_v36, %v680_v62  ;;  %v634_v9 = vmul.f32 %v1108_v51, %v633_v63  ;;  %1117 = vrcp.f32 %v630_v15 }
 0x1aa   :  { %738 = vst [vmem:[#allocation2 + $0x10] sm:$0xff] %v674_v7  ;;  %v689_v11 = vsel %vm1576_vm6, %v688_v60, %v684_v8  ;;  %v649_v12 = vmul.f32 %v1110_v55, %v648_v3  ;;  %v730_v30 = vand.u32 2147483647, %v630_v15  ;;  %v732_v32 = vand.u32 2147483648, %v630_v15 }
 0x1ab   :  { %739 = vst [vmem:[#allocation2 + $0x18] sm:$0xff] %v689_v11  ;;  %v635_v14 = vadd.f32 %v1108_v51, %v634_v9  ;;  %v1114_v16 = vpop.eup %1113  ;;  %vm726_vm3 = vweird.f32 %v630_v15 }
 0x1ac   :  { %v650_v18 = vadd.f32 %v1110_v55, %v649_v12  ;;  %v1116_v19 = vpop.eup %1115  ;;  %v628_v24 = vadd.f32 1.0, %v1114_v16  ;;  %vm731_vm4 = vcmp.eq.f32.partialorder %v730_v30, 8.507059e+37  ;;  %v733_v39 = vor.u32 1.1754944e-38, %v732_v32 }
 0x1ad   :  { %v639_v20 = vsel %vm638_vm12, %v1108_v51, %v635_v14  ;;  %v629_v26 = vadd.f32 1.0, %v1116_v19 }
 0x1ae   :  { %v644_v22 = vsel %vm641_vm14, %v643_v17, %v639_v20  ;;  %v654_v23 = vsel %vm653_vm15, %v1110_v55, %v650_v18  ;;  %1119 = vrcp.f32 %v628_v24  ;;  %v702_v40 = vand.u32 2147483648, %v628_v24 }
 0x1af   :  { %736 = vst [vmem:[#allocation2] sm:$0xff] %v644_v22  ;;  %v659_v25 = vsel %vm656_vm1, %v658_v21, %v654_v23  ;;  %1121 = vrcp.f32 %v629_v26  ;;  %v1118_v27 = vpop.eup %1117  ;;  %v700_v43 = vand.u32 2147483647, %v628_v24  ;;  %v717_v44 = vand.u32 2147483648, %v629_v26 }
 0x1b0   :  { %737 = vst [vmem:[#allocation2 + $0x8] sm:$0xff] %v659_v25  ;;  %v722_v28 = vmul.f32 %v1118_v27, %v630_v15  ;;  %vm727_vm2 = vweird.f32 %v1118_v27  ;;  %v715_v47 = vand.u32 2147483647, %v629_v26  ;;  %vm696_vm8 = vweird.f32 %v628_v24 }
 0x1b1   :  { %vm728_vm5 = vmor %vm726_vm3, %vm727_vm2  ;;  %v703_v50 = vor.u32 1.1754944e-38, %v702_v40  ;;  %vm711_vm10 = vweird.f32 %v629_v26  ;;  %vm701_vm11 = vcmp.eq.f32.partialorder %v700_v43, 8.507059e+37  ;;  %v718_v53 = vor.u32 1.1754944e-38, %v717_v44 }
 0x1b2   :  { %v723_v31 = vsub.f32 1.0, %v722_v28  ;;  %vm716_vm13 = vcmp.eq.f32.partialorder %v715_v47, 8.507059e+37 }
 0x1b4   :  { %v1120_v29 = vpop.eup %1119  ;;  %v724_v35 = vmul.f32 %v1118_v27, %v723_v31 }
 0x1b5   :  { %v1122_v33 = vpop.eup %1121  ;;  %v692_v34 = vmul.f32 %v1120_v29, %v628_v24  ;;  %vm697_vm6 = vweird.f32 %v1120_v29 }
 0x1b6   :  { %v707_v36 = vmul.f32 %v1122_v33, %v629_v26  ;;  %v725_v38 = vadd.f32 %v1118_v27, %v724_v35  ;;  %vm712_vm7 = vweird.f32 %v1122_v33  ;;  %vm698_vm9 = vmor %vm696_vm8, %vm697_vm6 }
 0x1b7   :  { %v693_v37 = vsub.f32 1.0, %v692_v34  ;;  %vm713_vm12 = vmor %vm711_vm10, %vm712_vm7 }
 0x1b8   :  { %v708_v41 = vsub.f32 1.0, %v707_v36  ;;  %v729_v45 = vsel %vm728_vm5, %v1118_v27, %v725_v38 }
 0x1b9   :  { %v694_v42 = vmul.f32 %v1120_v29, %v693_v37  ;;  %v734_v48 = vsel %vm731_vm4, %v733_v39, %v729_v45 }
 0x1ba   :  { %v709_v46 = vmul.f32 %v1122_v33, %v708_v41  ;;  %742 = vst.msk [vmem:[#allocation2 + $0x30] sm:$0xff] %vm42_vm0, %v734_v48 }
 0x1bb   :  { %v695_v49 = vadd.f32 %v1120_v29, %v694_v42 }
 0x1bc   :  { %v710_v51 = vadd.f32 %v1122_v33, %v709_v46 }
 0x1bd   :  { %v699_v52 = vsel %vm698_vm9, %v1120_v29, %v695_v49 }
 0x1be   :  { %v704_v54 = vsel %vm701_vm11, %v703_v50, %v699_v52  ;;  %v714_v55 = vsel %vm713_vm12, %v1122_v33, %v710_v51 }
 0x1bf   :  { %740 = vst [vmem:[#allocation2 + $0x20] sm:$0xff] %v704_v54  ;;  %v719_v56 = vsel %vm716_vm13, %v718_v53, %v714_v55 }
 0x1c0   :  { %741 = vst [vmem:[#allocation2 + $0x28] sm:$0xff] %v719_v56 }
 0x1c1   :  { %753 = dma.vmem_to_hbm [thread:$0]  %s749_s6, 896, %s751_s2, [#allocation3]  }
 0x1c2   :  { %1147 = dma.done.wait [#allocation3], 896  }
 0x1c3   :  { %1148 = vsyncadd [#allocation3], 4294966400 }
 0x1c4   :  { %758 = vsyncpa [#allocation3], 1 }

</bundles_post_ra>
